<compile_context>
chip_gen: v7x
topology: tpu7x:2x2x1
jax: 0.10.0
libtpu: 0.0.40
codegen_flags: <defaults>
</compile_context>

<pallas_src>
import functools

import jax
import jax.numpy as jnp
from jax.experimental import pallas as pl
from jax.experimental.pallas import tpu as pltpu


def _round_up(x, m):
    return ((x + m - 1) // m) * m


def _vmem_capacity_bytes():
    try:
        return int(pltpu.get_tpu_info().vmem_capacity_bytes)
    except Exception:
        return 64 << 20  # conservative fallback (v7x per-core VMEM)


def _apply_act(v, activ_type):
    if activ_type == "relu":
        return jnp.maximum(v, 0.0)
    if activ_type == "sigmoid":
        return jax.nn.sigmoid(v)  # exp lowers to the EUP slot
    return v


def _mlp_kernel(x_ref, w1_ref, b1_ref, w2_ref, b2_ref, o_ref, *, activ_type):
    """activ(activ(x @ W1 + b1) @ W2 + b2); weights pre-transposed to (in, out)."""
    # Layer 1 — MXU matmul in the operands' native dtype, f32 accumulation.
    h = jnp.dot(x_ref[...], w1_ref[...], preferred_element_type=jnp.float32)
    h = _apply_act(h + b1_ref[...], activ_type)
    # Layer 2 — feed the MXU in the weight dtype (identity cast for f32).
    y = jnp.dot(h.astype(w2_ref.dtype), w2_ref[...],
                preferred_element_type=jnp.float32)
    y = _apply_act(y + b2_ref[...], activ_type)
    o_ref[...] = y.astype(o_ref.dtype)


def mlp_forward(x, w1, b1, w2, b2, *, activ_type="relu", batch_tile=None,
                compute_dtype=None):
    """Pallas wrapper.

    x : (B, input_dim)
    w1: (hidden_dim, input_dim), b1: (hidden_dim,)   [PyTorch Linear layout]
    w2: (output_dim, hidden_dim), b2: (output_dim,)
    """
    B, in_dim = x.shape
    hidden_dim = w1.shape[0]
    out_dim = w2.shape[0]
    out_dtype = x.dtype

    # Hidden dim padded to a lane multiple (in-VMEM only).  W2's zeroed padded
    # rows kill any contribution from the padded hidden columns, so exact.
    hid_p = _round_up(hidden_dim, 128)
    # Output lanes: keep small outputs unpadded (8x fewer HBM write bytes for
    # out_dim=16 beats lane-dense stores); pad only wide ragged outputs.
    if out_dim <= 128 or out_dim % 128 == 0:
        out_cols = out_dim
    else:
        out_cols = _round_up(out_dim, 128)

    if compute_dtype is not None:
        # Optional bf16 feeding (v6e/v7x MXU rate + halved resident weights).
        x = x.astype(compute_dtype)
        w1 = w1.astype(compute_dtype)
        w2 = w2.astype(compute_dtype)

    # One-time layout plumbing (plain JAX, outside the kernel): weights
    # transposed to (in, out) and zero-padded; x passes through untouched.
    w1_t = jnp.zeros((in_dim, hid_p), w1.dtype).at[:, :hidden_dim].set(w1.T)
    w2_t = jnp.zeros((hid_p, out_cols), w2.dtype).at[:hidden_dim, :out_dim].set(w2.T)
    b1_p = jnp.zeros((1, hid_p), jnp.float32).at[0, :hidden_dim].set(
        b1.astype(jnp.float32))
    b2_p = jnp.zeros((1, out_cols), jnp.float32).at[0, :out_dim].set(
        b2.astype(jnp.float32))

    x_bytes = jnp.dtype(x.dtype).itemsize
    w_bytes = jnp.dtype(w1_t.dtype).itemsize
    o_bytes = jnp.dtype(out_dtype).itemsize
    in_vmem = _round_up(in_dim, 128)      # lane padding of the x tile in VMEM
    out_vmem = _round_up(out_cols, 128)   # lane padding of the out tile in VMEM

    def vmem_needed(bt):
        return (2 * bt * in_vmem * x_bytes                    # x tile (double-buffered)
                + _round_up(in_dim, 8) * hid_p * w_bytes      # W1 (single-buffered)
                + hid_p * out_vmem * w_bytes                  # W2 (single-buffered)
                + (hid_p + out_vmem) * 4                      # biases
                + bt * hid_p * 4                              # hidden activations (f32)
                + 2 * bt * out_vmem * o_bytes)                # out tile (double-buffered)

    # Batch tile: large (cap 512), 8-aligned; keep >=2 grid steps when the
    # batch is big enough so the "parallel" axis can split across v7x's 2 TCs.
    if batch_tile is None:
        bt = 512
        if B >= 128:
            bt = min(bt, _round_up(pl.cdiv(B, 2), 8))
    else:
        bt = int(batch_tile)
    bt = B if bt >= B else max(8, (bt // 8) * 8)

    vmem_budget = int(0.8 * _vmem_capacity_bytes())  # generation-aware limit
    while vmem_needed(bt) > vmem_budget and bt > 8:
        new_bt = bt // 2
        new_bt = B if new_bt >= B else max(8, (new_bt // 8) * 8)
        if new_bt == bt:
            break
        bt = new_bt
    if vmem_needed(bt) > vmem_budget:
        # TODO(synk): add a K-tiled grid axis ("arbitrary") over in/hidden dims
        # with an f32 VMEM accumulator for models whose weights are not
        # VMEM-resident (needed sooner on v7x's 64 MiB VMEM).
        raise ValueError("MLP weights too large for the resident-weights fast "
                         "path; K-tiled fallback not implemented.")

    grid_len = pl.cdiv(B, bt)

    flops = 2 * B * (in_dim * hid_p + hid_p * out_cols)
    transcendentals = B * (hid_p + out_cols) if activ_type == "sigmoid" else 0
    # Weights/biases counted ONCE: constant-index blocks are fetched once.
    bytes_accessed = (B * in_dim * x_bytes + B * out_cols * o_bytes
                      + (in_dim * hid_p + hid_p * out_cols) * w_bytes
                      + (hid_p + out_cols) * 4)

    kernel = functools.partial(_mlp_kernel, activ_type=activ_type)
    # Single-buffered resident blocks (index map constant across the grid).
    resident = functools.partial(pl.BlockSpec, pipeline_mode=pl.Buffered(1))

    out = pl.pallas_call(
        kernel,
        out_shape=jax.ShapeDtypeStruct((B, out_cols), out_dtype),
        grid_spec=pltpu.PrefetchScalarGridSpec(
            num_scalar_prefetch=0,
            grid=(grid_len,),
            in_specs=[
                pl.BlockSpec((bt, in_dim), lambda i: (i, 0)),   # x tile (unpadded)
                resident((in_dim, hid_p), lambda i: (0, 0)),    # W1^T, 1 buffer
                resident((1, hid_p), lambda i: (0, 0)),         # b1
                resident((hid_p, out_cols), lambda i: (0, 0)),  # W2^T, 1 buffer
                resident((1, out_cols), lambda i: (0, 0)),      # b2
            ],
            out_specs=pl.BlockSpec((bt, out_cols), lambda i: (i, 0)),
        ),
        compiler_params=pltpu.CompilerParams(
            dimension_semantics=("parallel",),
            vmem_limit_bytes=vmem_budget,
        ),
        cost_estimate=pl.CostEstimate(
            flops=flops,
            transcendentals=transcendentals,
            bytes_accessed=bytes_accessed,
        ),
    )(x, w1_t, b1_p, w2_t, b2_p)

    return out if out_cols == out_dim else out[:, :out_dim]


def mlp_reference(x, w1, b1, w2, b2, activ_type="relu"):
    """Pure-JAX reference mirroring the PyTorch forward."""
    def act(v):
        return jnp.maximum(v, 0.0) if activ_type == "relu" else jax.nn.sigmoid(v)
    h = act(x @ w1.T + b1)
    return act(h @ w2.T + b2)


def _make_params(key, input_dim, hidden_dim, output_dim):
    kw1, kb1, kw2, kb2 = jax.random.split(key, 4)
    lim1 = 1.0 / (input_dim ** 0.5)
    lim2 = 1.0 / (hidden_dim ** 0.5)
    w1 = jax.random.uniform(kw1, (hidden_dim, input_dim), jnp.float32, -lim1, lim1)
    b1 = jax.random.uniform(kb1, (hidden_dim,), jnp.float32, -lim1, lim1)
    w2 = jax.random.uniform(kw2, (output_dim, hidden_dim), jnp.float32, -lim2, lim2)
    b2 = jax.random.uniform(kb2, (output_dim,), jnp.float32, -lim2, lim2)
    return w1, b1, w2, b2


if __name__ == "__main__":
    # Module config: MLP(input_dim, output_dim, hidden_dim, 'linear', activ)
    input_dim, output_dim, hidden_dim = 32, 16, 64

    key = jax.random.PRNGKey(0)
    kx1, kx2, kx3, kp = jax.random.split(key, 4)
    w1, b1, w2, b2 = _make_params(kp, input_dim, hidden_dim, output_dim)

    # Case 1: tiny batch, relu (single full-batch block, no padding anywhere).
    x1 = jax.random.normal(kx1, (8, input_dim), dtype=jnp.float32)
    out1 = jax.block_until_ready(mlp_forward(x1, w1, b1, w2, b2, activ_type="relu"))
    ref1 = mlp_reference(x1, w1, b1, w2, b2, activ_type="relu")
    assert out1.shape == (8, output_dim)
    assert jnp.allclose(out1, ref1, atol=1e-5, rtol=1e-5), "relu mismatch vs reference"

    # Case 2: multi-step grid with a PARTIAL last block + sigmoid
    # (B=200 -> tile 104, grid=2; garbage rows in the padded last block only
    #  touch their own, never-written output rows).
    x2 = jax.random.normal(kx2, (200, input_dim), dtype=jnp.float32)
    out2 = jax.block_until_ready(
        mlp_forward(x2, w1, b1, w2, b2, activ_type="sigmoid"))
    ref2 = mlp_reference(x2, w1, b1, w2, b2, activ_type="sigmoid")
    assert out2.shape == (200, output_dim)
    assert jnp.allclose(out2, ref2, atol=1e-5, rtol=1e-5), "sigmoid mismatch vs reference"

    # Case 3: batch not a multiple of 8, explicit small tile, relu.
    x3 = jax.random.normal(kx3, (13, input_dim), dtype=jnp.float32)
    out3 = jax.block_until_ready(
        mlp_forward(x3, w1, b1, w2, b2, activ_type="relu", batch_tile=8))
    ref3 = mlp_reference(x3, w1, b1, w2, b2, activ_type="relu")
    assert out3.shape == (13, output_dim)
    assert jnp.allclose(out3, ref3, atol=1e-5, rtol=1e-5), "partial-block mismatch"

    print("KERNEL_OK")
</pallas_src>

<mosaic_0001>
module attributes {stable_mosaic.version = 11 : i64} {
  func.func @_mlp_kernel(%arg0: i32, %arg1: memref<8x32xf32, #tpu.memory_space<vmem>>, %arg2: memref<32x128xf32, #tpu.memory_space<vmem>>, %arg3: memref<1x128xf32, #tpu.memory_space<vmem>>, %arg4: memref<128x16xf32, #tpu.memory_space<vmem>>, %arg5: memref<1x16xf32, #tpu.memory_space<vmem>>, %arg6: memref<8x16xf32, #tpu.memory_space<vmem>>) attributes {dimension_semantics = [#tpu.dimension_semantics<parallel>], iteration_bounds = array<i64: 1>, scalar_prefetch = 0 : i64, scratch_operands = 0 : i64, tpu.core_type = #tpu.core_type<tc>, window_params = [{transform_indices = @transform_0, window_bounds = array<i64: 8, 32>}, {pipeline_mode = #tpu.pipeline_mode<synchronous>, transform_indices = @transform_1, window_bounds = array<i64: 32, 128>}, {pipeline_mode = #tpu.pipeline_mode<synchronous>, transform_indices = @transform_2, window_bounds = array<i64: 1, 128>}, {pipeline_mode = #tpu.pipeline_mode<synchronous>, transform_indices = @transform_3, window_bounds = array<i64: 128, 16>}, {pipeline_mode = #tpu.pipeline_mode<synchronous>, transform_indices = @transform_4, window_bounds = array<i64: 1, 16>}, {transform_indices = @transform_5, window_bounds = array<i64: 8, 16>}]} {
    %c0 = arith.constant 0 : index
    %c0_0 = arith.constant 0 : index
    %0 = vector.load %arg1[%c0, %c0_0] : memref<8x32xf32, #tpu.memory_space<vmem>>, vector<8x32xf32>
    %c0_1 = arith.constant 0 : index
    %c0_2 = arith.constant 0 : index
    %1 = vector.load %arg2[%c0_1, %c0_2] : memref<32x128xf32, #tpu.memory_space<vmem>>, vector<32x128xf32>
    %cst = arith.constant dense<0.000000e+00> : vector<8x128xf32>
    %2 = tpu.matmul %0, %1, %cst {dimension_numbers = #tpu.dot_dimension_numbers<[1], [0], [0], [1], [0, 0, 1, 1], [], []>} : vector<8x32xf32>, vector<32x128xf32>, vector<8x128xf32> -> vector<8x128xf32>
    %c0_3 = arith.constant 0 : index
    %c0_4 = arith.constant 0 : index
    %3 = vector.load %arg3[%c0_3, %c0_4] : memref<1x128xf32, #tpu.memory_space<vmem>>, vector<1x128xf32>
    %4 = vector.broadcast %3 : vector<1x128xf32> to vector<8x128xf32>
    %5 = arith.addf %2, %4 : vector<8x128xf32>
    %cst_5 = arith.constant 0.000000e+00 : f32
    %6 = vector.broadcast %cst_5 : f32 to vector<8x128xf32>
    %7 = arith.maximumf %5, %6 : vector<8x128xf32>
    %c0_6 = arith.constant 0 : index
    %c0_7 = arith.constant 0 : index
    %8 = vector.load %arg4[%c0_6, %c0_7] : memref<128x16xf32, #tpu.memory_space<vmem>>, vector<128x16xf32>
    %cst_8 = arith.constant dense<0.000000e+00> : vector<8x16xf32>
    %9 = tpu.matmul %7, %8, %cst_8 {dimension_numbers = #tpu.dot_dimension_numbers<[1], [0], [0], [1], [0, 0, 1, 1], [], []>} : vector<8x128xf32>, vector<128x16xf32>, vector<8x16xf32> -> vector<8x16xf32>
    %c0_9 = arith.constant 0 : index
    %c0_10 = arith.constant 0 : index
    %10 = vector.load %arg5[%c0_9, %c0_10] : memref<1x16xf32, #tpu.memory_space<vmem>>, vector<1x16xf32>
    %11 = vector.broadcast %10 : vector<1x16xf32> to vector<8x16xf32>
    %12 = arith.addf %9, %11 : vector<8x16xf32>
    %cst_11 = arith.constant 0.000000e+00 : f32
    %13 = vector.broadcast %cst_11 : f32 to vector<8x16xf32>
    %14 = arith.maximumf %12, %13 : vector<8x16xf32>
    %c0_12 = arith.constant 0 : index
    %c0_13 = arith.constant 0 : index
    %15 = vector.load %arg6[%c0_12, %c0_13] : memref<8x16xf32, #tpu.memory_space<vmem>>, vector<8x16xf32>
    tpu.vector_store %arg6[%c0_12, %c0_13], %14 {strides = array<i32>} : memref<8x16xf32, #tpu.memory_space<vmem>>, vector<8x16xf32>,
    return
  }
  func.func @transform_0(%arg0: i32) -> (i32, i32) {
    %c0_i32 = arith.constant 0 : i32
    %c0_i32_0 = arith.constant 0 : i32
    return %arg0, %c0_i32 : i32, i32
  }
  func.func @transform_1(%arg0: i32) -> (i32, i32) {
    %c0_i32 = arith.constant 0 : i32
    %c0_i32_0 = arith.constant 0 : i32
    %c0_i32_1 = arith.constant 0 : i32
    return %c0_i32, %c0_i32_0 : i32, i32
  }
  func.func @transform_2(%arg0: i32) -> (i32, i32) {
    %c0_i32 = arith.constant 0 : i32
    %c0_i32_0 = arith.constant 0 : i32
    %c0_i32_1 = arith.constant 0 : i32
    return %c0_i32, %c0_i32_0 : i32, i32
  }
  func.func @transform_3(%arg0: i32) -> (i32, i32) {
    %c0_i32 = arith.constant 0 : i32
    %c0_i32_0 = arith.constant 0 : i32
    %c0_i32_1 = arith.constant 0 : i32
    return %c0_i32, %c0_i32_0 : i32, i32
  }
  func.func @transform_4(%arg0: i32) -> (i32, i32) {
    %c0_i32 = arith.constant 0 : i32
    %c0_i32_0 = arith.constant 0 : i32
    %c0_i32_1 = arith.constant 0 : i32
    return %c0_i32, %c0_i32_0 : i32, i32
  }
  func.func @transform_5(%arg0: i32) -> (i32, i32) {
    %c0_i32 = arith.constant 0 : i32
    %c0_i32_0 = arith.constant 0 : i32
    return %arg0, %c0_i32 : i32, i32
  }
}

</mosaic_0001>

<bundles_post_ra>
// kernel: tpu_custom_call.1
= control target key start
LH: loop header
LB: loop body
LE: loop exit
PB: predicated region body
PF: predicated region fallthrough
CT: control target
= control target key end

     0   :  { %v347_v3 = vmov 0.0|0.0   ;;  %vm348_vm0 = vmmov 0   ;;  %v349_v6 = vmov 0.0   ;;  %s462_s0 = inlined_call_operand.vmem [shape: f32[8,32], index: 0, kind: input, shape index: {}]   ;;  %s463_s1 = inlined_call_operand.vmem [shape: f32[32,128], index: 1, kind: input, shape index: {}]   ;;  %s464_s2 = inlined_call_operand.vmem [shape: f32[1,128], index: 2, kind: input, shape index: {}]   ;;  %s465_s3 = inlined_call_operand.vmem [shape: f32[128,16], index: 3, kind: input, shape index: {}]   ;;  %s466_s4 = inlined_call_operand.vmem [shape: f32[1,16], index: 4, kind: input, shape index: {}]   ;;  %s467_s5 = inlined_call_operand.hbm [shape: f32[8,16], index: 5, kind: output, shape index: {}]  }
   0x1   :  { %v22_v0 = vld [vmem:[%s463_s1] sm:$0xff]  ;;  %v23_v1 = vld [vmem:[%s463_s1 + $0x8] sm:$0xff]  ;;  %v24_v2 = vld [vmem:[%s463_s1 + $0x10] sm:$0xff]  ;;  %289 = vmatprep.subr.bf16.mxu0 %v347_v3  ;;  %251 = vmatprep.mubr.msk.f32.mxu0 %vm348_vm0, %v349_v6 }
   0x2   :  { %v290_v4 = vpack.c.bf16 %v23_v1, %v22_v0  ;;  %v25_v5 = vld [vmem:[%s463_s1 + $0x18] sm:$0xff]  ;;  %v108_v7 = vld [vmem:[%s465_s3] sm:$0xff]  ;;  %295 = vmatprep.subr.bf16.mxu1 %v347_v3  ;;  %v109_v8 = vld [vmem:[%s465_s3 + $0x8] sm:$0xff]  ;;  %286 = vmatprep.mubr.msk.f32.mxu1 %vm348_vm0, %v349_v6 }
   0x3   :  { %v110_v9 = vld [vmem:[%s465_s3 + $0x10] sm:$0xff]  ;;  %v111_v10 = vld [vmem:[%s465_s3 + $0x18] sm:$0xff]  ;;  %v293_v11 = vpack.c.bf16 %v25_v5, %v24_v2  ;;  %v296_v12 = vpack.c.bf16 %v109_v8, %v108_v7  ;;  %v112_v14 = vld [vmem:[%s465_s3 + $0x20] sm:$0xff] }
   0x4   :  { %291 = vmatpush3.bf16.msra.mxu0 %v290_v4  ;;  %v299_v13 = vpack.c.bf16 %v111_v10, %v110_v9  ;;  %v113_v15 = vld [vmem:[%s465_s3 + $0x28] sm:$0xff] }
   0x5   :  { %292 = vmatprep.subr.bf16.mxu0 %v347_v3  ;;  %297 = vmatpush3.bf16.msra.mxu1 %v296_v12 }
   0x6   :  { %298 = vmatprep.subr.bf16.mxu1 %v347_v3 }
   0x7   :  { %10 = vsyncpa [#allocation3], 0  ;;  %v21_v16 = vld [vmem:[%s462_s0] sm:$0xff]  ;;  %vm33_vm1 = vcmask 261120   ;;  %v302_v17 = vpack.c.bf16 %v113_v15, %v112_v14  ;;  %v114_v18 = vld [vmem:[%s465_s3 + $0x30] sm:$0xff]  ;;  %s350_s11 = smov [#allocation2]  }
   0x8   :  { %294 = vmatpush3.bf16.msra.mxu0 %v293_v11  ;;  %v115_v19 = vld [vmem:[%s465_s3 + $0x38] sm:$0xff]  ;;  %v116_v21 = vld [vmem:[%s465_s3 + $0x40] sm:$0xff]  ;;  %v117_v22 = vld [vmem:[%s465_s3 + $0x48] sm:$0xff]  ;;  %s210_s12 = sshll.u32 %s350_s11, 4  ;;  %vm202_vm2 = vcmask 130048   ;;  %s211_s12 = int_to_ptr.vmem [resolvable:$true] %s210_s12 }
   0x9   :  { %300 = vmatpush3.bf16.msra.mxu1 %v299_v13  ;;  %v305_v20 = vpack.c.bf16 %v115_v19, %v114_v18  ;;  %v308_v23 = vpack.c.bf16 %v117_v22, %v116_v21  ;;  %v118_v24 = vld [vmem:[%s465_s3 + $0x50] sm:$0xff]  ;;  %v119_v25 = vld [vmem:[%s465_s3 + $0x58] sm:$0xff]  ;;  %v120_v27 = vld [vmem:[%s465_s3 + $0x60] sm:$0xff]  ;;  %p328_p1 = scmp.lt.s32.totalorder %s211_s12, %s211_s12 }
   0xa   :  { %301 = vmatprep.subr.bf16.mxu1 %v347_v3  ;;  %v311_v26 = vpack.c.bf16 %v119_v25, %v118_v24  ;;  %v121_v28 = vld [vmem:[%s465_s3 + $0x68] sm:$0xff]  ;;  %v122_v30 = vld [vmem:[%s465_s3 + $0x70] sm:$0xff]  ;;  %v123_v31 = vld [vmem:[%s465_s3 + $0x78] sm:$0xff]  ;;  %s323_s3 = scalar_lea.vmem %s211_s12, 128 }
   0xb   :  { %252 = vmatmul.mubr.msk.f32.vlgmr.msra.gmra.mrb[0].mxu0 %vm33_vm1, %v21_v16  ;;  %v314_v29 = vpack.c.bf16 %v121_v28, %v120_v27  ;;  %v317_v32 = vpack.c.bf16 %v123_v31, %v122_v30  ;;  %v218_v33 = vld [vmem:[%s464_s2] ss:$0 sm:$0xff]  ;;  %p324_p0 = scmp.ne.s32.totalorder %s211_s12, %s323_s3  ;;  %p329_p2 = scmp.lt.s32.totalorder %s323_s3, %s323_s3 }
   0xc   :  { %v220_v38 = vld [vmem:[%s466_s4] ss:$0 sm:$0xff] }
   0xd   :  { %303 = vmatpush3.bf16.msra.mxu1 %v302_v17  ;;  %p330_p3 = por %p329_p2, %p328_p1 }
   0xe   :  { %304 = vmatprep.subr.bf16.mxu1 %v347_v3 }
   0xf   :  { %p331_p4 = pnand %p330_p3, %p324_p0 }
  0x11   :  { %306 = vmatpush3.bf16.msra.mxu1 %v305_v20 }
  0x12   :  { %307 = vmatprep.subr.bf16.mxu1 %v347_v3 }
  0x15   :  { %309 = vmatpush3.bf16.msra.mxu1 %v308_v23 }
  0x16   :  { %310 = vmatprep.subr.bf16.mxu1 %v347_v3 }
  0x19   :  { %312 = vmatpush3.bf16.msra.mxu1 %v311_v26 }
  0x1a   :  { %313 = vmatprep.subr.bf16.mxu1 %v347_v3 }
  0x1d   :  { %315 = vmatpush3.bf16.msra.mxu1 %v314_v29 }
  0x1e   :  { %316 = vmatprep.subr.bf16.mxu1 %v347_v3 }
  0x21   :  { %318 = vmatpush3.bf16.msra.mxu1 %v317_v32 }
  0xde   :  { %v103_v34 = vpop.f32.mrb[0].mxu0 }
  0xdf   :  { %v104_v35 = vadd.f32 %v218_v33, %v103_v34  ;;  %v253_v36 = vpop.f32.mrb[1].mxu0 }
  0xe1   :  { %v107_v37 = vmax.f32 %v104_v35, 0.0 }
  0xe3   :  { %287 = vmatmul.mubr.f32.vlgmr.msra.gmra.mrb[0].mxu1 %v107_v37 }
 0x1b6   :  { %v197_v39 = vpop.f32.mrb[0].mxu1 }
 0x1b7   :  { %v198_v40 = vadd.f32 %v220_v38, %v197_v39  ;;  %v288_v41 = vpop.f32.mrb[1].mxu1 }
 0x1b9   :  { %v201_v42 = vmax.f32 %v198_v40, 0.0 }
 0x1bb   :  { %203 = vst.msk [vmem:[#allocation2] sm:$0xff] %vm202_vm2, %v201_v42 }
 0x1bc   :  { %334 = shalt.err (!%p331_p4)
}
 0x1bd   :  { %s335_s4 = scalar_lea.hbm %s467_s5, 128 }
 0x1be   :  { %p336_p5 = scmp.ne.s32.totalorder %s467_s5, %s335_s4  ;;  %p339_p6 = scmp.lt.u32.totalorder %s335_s4, %s467_s5 }
 0x1c0   :  { %p341_p7 = pnand %p339_p6, %p336_p5 }
 0x1c2   :  { %344 = shalt.err (!%p341_p7)
}
 0x1c3   :  { %213 = dma.vmem_to_hbm [thread:$0]  %s211_s12, 128, %s467_s5, [#allocation3]  }
 0x1c4   :  { %345 = dma.done.wait [#allocation3], 128  }
 0x1c5   :  { %346 = vsyncadd [#allocation3], 4294967168 }
 0x1c6   :  { %217 = vsyncpa [#allocation3], 1 }

</bundles_post_ra>
